<compile_context>
chip_gen: v7x
topology: tpu7x:2x2x1
jax: 0.10.0
libtpu: 0.0.40
codegen_flags: <defaults>
</compile_context>

<pallas_src>
import jax
import jax.numpy as jnp
from jax.experimental import pallas as pl
from jax.experimental.pallas import tpu as pltpu


def _round_up(x, m):
    return ((x + m - 1) // m) * m


def _pick_tile_v(Hp, Vp, max_tile_bytes):
    """Largest multiple-of-128 divisor of Vp whose bf16 W_out tile fits the budget."""
    best = 128
    t = 128
    while t <= Vp:
        if Vp % t == 0 and Hp * t * 2 <= max_tile_bytes:
            best = t
        t += 128
    return best


def _vmem_limit_bytes():
    """Generation-aware VMEM budget (v7x has 64 MiB vs 128 MiB on v5e/v6e)."""
    try:
        cap = int(pltpu.get_tpu_info().vmem_capacity_bytes)
    except Exception:
        cap = 64 * 1024 * 1024  # conservative fallback (safe on every generation)
    return min((cap * 7) // 8, 100 * 1024 * 1024)


def init_params(key, hidden_size, output_size):
    """Natural (PyTorch-equivalent) parameters: weights stored (in, out)."""
    H, V = hidden_size, output_size
    ks = jax.random.split(key, 16)
    bound = 1.0 / jnp.sqrt(jnp.float32(H))
    u = lambda k, shape: jax.random.uniform(k, shape, jnp.float32, -bound, bound)
    return {
        "emb":   jax.random.normal(ks[0], (V, H), jnp.float32),
        "w_ir": u(ks[1], (H, H)), "w_iz": u(ks[2], (H, H)), "w_in": u(ks[3], (H, H)),
        "w_hr": u(ks[4], (H, H)), "w_hz": u(ks[5], (H, H)), "w_hn": u(ks[6], (H, H)),
        "b_ir": u(ks[7],  (1, H)), "b_iz": u(ks[8],  (1, H)), "b_in": u(ks[9],  (1, H)),
        "b_hr": u(ks[10], (1, H)), "b_hz": u(ks[11], (1, H)), "b_hn": u(ks[12], (1, H)),
        "w_out": u(ks[13], (H, V)),
        "b_out": u(ks[14], (1, V)),
    }


def pack_params(p, max_tile_bytes=4 * 1024 * 1024):
    """Pad to lane-dense shapes, fuse GRU gates, cast weights to bf16,
    repack W_out tile-major for contiguous per-tile DMA."""
    V, H = p["emb"].shape
    Hp = _round_up(H, 128)
    Vp = _round_up(V, 128)
    tile_v = _pick_tile_v(Hp, Vp, max_tile_bytes)
    n_vt = Vp // tile_v

    f32, bf16 = jnp.float32, jnp.bfloat16

    def pad2(a, rows, cols):
        return jnp.pad(a, ((0, rows - a.shape[0]), (0, cols - a.shape[1])))

    wi = jnp.concatenate([pad2(p["w_ir"], Hp, Hp),
                          pad2(p["w_iz"], Hp, Hp),
                          pad2(p["w_in"], Hp, Hp)], axis=1).astype(bf16)
    wh = jnp.concatenate([pad2(p["w_hr"], Hp, Hp),
                          pad2(p["w_hz"], Hp, Hp),
                          pad2(p["w_hn"], Hp, Hp)], axis=1).astype(bf16)
    bi = jnp.concatenate([pad2(p["b_ir"], 1, Hp),
                          pad2(p["b_iz"], 1, Hp),
                          pad2(p["b_in"], 1, Hp)], axis=1).astype(f32)
    bh = jnp.concatenate([pad2(p["b_hr"], 1, Hp),
                          pad2(p["b_hz"], 1, Hp),
                          pad2(p["b_hn"], 1, Hp)], axis=1).astype(f32)

    # Embedding table in bf16, reshaped to (V, 1, Hp) so a (1, 1, Hp) block
    # cleanly gathers exactly one row via the scalar-prefetched token id.
    emb = pad2(p["emb"], V, Hp).astype(bf16).reshape(V, 1, Hp)

    # Output projection repacked tile-major: tile j == w_out[:, j*tile_v:(j+1)*tile_v]
    # stored as one contiguous (Hp, tile_v) slab.
    w_out_full = pad2(p["w_out"], Hp, Vp).astype(bf16)                 # (Hp, Vp)
    w_out = w_out_full.reshape(Hp, n_vt, tile_v).transpose(1, 0, 2)    # (n_vt, Hp, tile_v)
    # Padded vocab columns get a huge negative f32 bias so they never influence
    # the running max / sum-exp of the online log-softmax.
    b_out_full = jnp.pad(p["b_out"], ((0, 0), (0, Vp - V)),
                         constant_values=-1e30).astype(f32)            # (1, Vp)
    b_out = b_out_full.reshape(1, n_vt, tile_v).transpose(1, 0, 2)     # (n_vt, 1, tile_v)

    return {"H": H, "V": V, "Hp": Hp, "Vp": Vp, "tile_v": tile_v, "n_vt": n_vt,
            "emb": emb, "wi": wi, "wh": wh, "bi": bi, "bh": bh,
            "w_out": w_out, "b_out": b_out}


def decoder_rnn_forward(token_id, hidden, kp):
    """token_id: int32 scalar; hidden: (1, 1, H) f32. Returns (logp, hidden')."""
    H, V = kp["H"], kp["V"]
    Hp, Vp, tile_v, n_vt = kp["Hp"], kp["Vp"], kp["tile_v"], kp["n_vt"]
    f32, bf16 = jnp.float32, jnp.bfloat16

    tok = jnp.asarray(token_id, jnp.int32).reshape(1)
    h_prev = jnp.pad(hidden.reshape(1, H).astype(f32), ((0, 0), (0, Hp - H)))

    def kernel(tok_ref, emb_ref, h_ref, wi_ref, wh_ref, bi_ref, bh_ref,
               wout_ref, bout_ref, logp_ref, hnew_ref, m_ref, l_ref):
        j = pl.program_id(0)

        # --- GRU step + softmax-carry init: run once (first vocab tile). ---
        @pl.when(j == 0)
        def _():
            m_ref[...] = jnp.full((1, 1), jnp.finfo(f32).min, f32)
            l_ref[...] = jnp.zeros((1, 1), f32)

            xb = jnp.maximum(emb_ref[0], 0.0)             # relu(embedding row), bf16
            hb = h_ref[...].astype(bf16)
            gi = jnp.dot(xb, wi_ref[...], preferred_element_type=f32) + bi_ref[...]
            gh = jnp.dot(hb, wh_ref[...], preferred_element_type=f32) + bh_ref[...]
            r = jax.nn.sigmoid(gi[:, :Hp] + gh[:, :Hp])
            z = jax.nn.sigmoid(gi[:, Hp:2 * Hp] + gh[:, Hp:2 * Hp])
            n = jnp.tanh(gi[:, 2 * Hp:] + r * gh[:, 2 * Hp:])
            hnew_ref[...] = (1.0 - z) * n + z * h_ref[...]

        # --- Output projection, streamed over tile-major vocab slabs ---
        hb_new = hnew_ref[...].astype(bf16)
        logits = jnp.dot(hb_new, wout_ref[...],
                         preferred_element_type=f32) + bout_ref[...]     # (1, tile_v) f32
        col = pl.multiple_of(j * tile_v, tile_v)
        logp_ref[:, pl.ds(col, tile_v)] = logits

        # --- Online softmax: fold this tile into the running (max, sum-exp) ---
        m_prev = m_ref[...]
        m_new = jnp.maximum(m_prev, jnp.max(logits, axis=-1, keepdims=True))
        l_ref[...] = (l_ref[...] * jnp.exp(m_prev - m_new)
                      + jnp.sum(jnp.exp(logits - m_new), axis=-1, keepdims=True))
        m_ref[...] = m_new

        # --- Finalize: only a single subtract pass over the resident logits ---
        @pl.when(j == pl.num_programs(0) - 1)
        def _():
            lse = m_ref[...] + jnp.log(l_ref[...])
            logp_ref[...] = logp_ref[...] - lse

    grid_spec = pltpu.PrefetchScalarGridSpec(
        num_scalar_prefetch=1,
        grid=(n_vt,),
        in_specs=[
            pl.BlockSpec((1, 1, Hp), lambda j, tok: (tok[0], 0, 0)),   # emb row (bf16)
            pl.BlockSpec((1, Hp), lambda j, tok: (0, 0)),              # h_prev
            pl.BlockSpec((Hp, 3 * Hp), lambda j, tok: (0, 0)),         # W_i (r|z|n)
            pl.BlockSpec((Hp, 3 * Hp), lambda j, tok: (0, 0)),         # W_h (r|z|n)
            pl.BlockSpec((1, 3 * Hp), lambda j, tok: (0, 0)),          # b_i
            pl.BlockSpec((1, 3 * Hp), lambda j, tok: (0, 0)),          # b_h
            pl.BlockSpec((None, Hp, tile_v), lambda j, tok: (j, 0, 0)),  # W_out slab j
            pl.BlockSpec((None, 1, tile_v), lambda j, tok: (j, 0, 0)),   # b_out slab j
        ],
        out_specs=(
            pl.BlockSpec((1, Vp), lambda j, tok: (0, 0)),              # logp (resident)
            pl.BlockSpec((1, Hp), lambda j, tok: (0, 0)),              # h_new (resident)
        ),
        scratch_shapes=[
            pltpu.VMEM((1, 1), jnp.float32),   # running max  (online softmax)
            pltpu.VMEM((1, 1), jnp.float32),   # running sum-exp
        ],
    )

    logp_p, hnew_p = pl.pallas_call(
        kernel,
        out_shape=(jax.ShapeDtypeStruct((1, Vp), f32),
                   jax.ShapeDtypeStruct((1, Hp), f32)),
        grid_spec=grid_spec,
        compiler_params=pltpu.CompilerParams(
            dimension_semantics=("arbitrary",),
            vmem_limit_bytes=_vmem_limit_bytes(),
        ),
    )(tok, kp["emb"], h_prev, kp["wi"], kp["wh"], kp["bi"], kp["bh"],
      kp["w_out"], kp["b_out"])

    return logp_p[:, :V], hnew_p[:, :H].reshape(1, 1, H)


def decoder_ref(token_id, hidden, p):
    """Pure-JAX f32 reference matching PyTorch DecoderRNN semantics."""
    H = p["emb"].shape[1]
    x = jnp.maximum(p["emb"][token_id].reshape(1, H), 0.0)
    h = hidden.reshape(1, H)
    gi_r = x @ p["w_ir"] + p["b_ir"]
    gi_z = x @ p["w_iz"] + p["b_iz"]
    gi_n = x @ p["w_in"] + p["b_in"]
    gh_r = h @ p["w_hr"] + p["b_hr"]
    gh_z = h @ p["w_hz"] + p["b_hz"]
    gh_n = h @ p["w_hn"] + p["b_hn"]
    r = jax.nn.sigmoid(gi_r + gh_r)
    z = jax.nn.sigmoid(gi_z + gh_z)
    n = jnp.tanh(gi_n + r * gh_n)
    h_new = (1.0 - z) * n + z * h
    logits = h_new @ p["w_out"] + p["b_out"]
    return jax.nn.log_softmax(logits, axis=-1), h_new.reshape(1, 1, H)


if __name__ == "__main__":
    # (hidden_size, output_size, max_tile_bytes): second config forces a tiny
    # W_out tile so the multi-tile online-softmax carry path is exercised.
    configs = [
        (32, 64, 4 * 1024 * 1024),   # single vocab tile
        (32, 300, 32 * 1024),        # 3 vocab tiles (tile_v=128, Vp=384)
    ]

    for hidden_size, output_size, mtb in configs:
        params = init_params(jax.random.PRNGKey(0), hidden_size, output_size)
        packed = pack_params(params, max_tile_bytes=mtb)

        token = jnp.array(5, dtype=jnp.int32)
        hidden0 = jnp.zeros((1, 1, hidden_size), dtype=jnp.float32)  # initHidden()

        fwd = jax.jit(lambda t, h, _p=packed: decoder_rnn_forward(t, h, _p))
        log_probs, hidden1 = fwd(token, hidden0)
        jax.block_until_ready((log_probs, hidden1))

        assert log_probs.shape == (1, output_size)
        assert hidden1.shape == (1, 1, hidden_size)
        # log-softmax row should sum to ~1 in prob space
        assert abs(float(jnp.sum(jnp.exp(log_probs))) - 1.0) < 1e-3

        # Validate against the f32 pure-JAX reference (bf16 weights -> loose tol)
        logp_ref, hid_ref = decoder_ref(token, hidden0, params)
        assert float(jnp.max(jnp.abs(log_probs - logp_ref))) < 1e-1
        assert float(jnp.max(jnp.abs(hidden1 - hid_ref))) < 1e-1

    print("KERNEL_OK")
</pallas_src>

<mosaic_0001>
module attributes {stable_mosaic.version = 11 : i64} {
  func.func @kernel(%arg0: i32, %arg1: memref<1xi32, #tpu.memory_space<smem>>, %arg2: memref<1x1x128xbf16, #tpu.memory_space<vmem>>, %arg3: memref<1x128xf32, #tpu.memory_space<vmem>>, %arg4: memref<128x384xbf16, #tpu.memory_space<vmem>>, %arg5: memref<128x384xbf16, #tpu.memory_space<vmem>>, %arg6: memref<1x384xf32, #tpu.memory_space<vmem>>, %arg7: memref<1x384xf32, #tpu.memory_space<vmem>>, %arg8: memref<1x128x128xbf16, #tpu.memory_space<vmem>>, %arg9: memref<1x1x128xf32, #tpu.memory_space<vmem>>, %arg10: memref<1x128xf32, #tpu.memory_space<vmem>>, %arg11: memref<1x128xf32, #tpu.memory_space<vmem>>, %arg12: memref<1x1xf32, #tpu.memory_space<vmem>>, %arg13: memref<1x1xf32, #tpu.memory_space<vmem>>) attributes {dimension_semantics = [#tpu.dimension_semantics<arbitrary>], iteration_bounds = array<i64: 1>, scalar_prefetch = 1 : i64, scratch_operands = 2 : i64, tpu.core_type = #tpu.core_type<tc>, window_params = [{transform_indices = @transform_0, window_bounds = array<i64: 1, 1, 128>}, {pipeline_mode = #tpu.pipeline_mode<synchronous>, transform_indices = @transform_1, window_bounds = array<i64: 1, 128>}, {pipeline_mode = #tpu.pipeline_mode<synchronous>, transform_indices = @transform_2, window_bounds = array<i64: 128, 384>}, {pipeline_mode = #tpu.pipeline_mode<synchronous>, transform_indices = @transform_3, window_bounds = array<i64: 128, 384>}, {pipeline_mode = #tpu.pipeline_mode<synchronous>, transform_indices = @transform_4, window_bounds = array<i64: 1, 384>}, {pipeline_mode = #tpu.pipeline_mode<synchronous>, transform_indices = @transform_5, window_bounds = array<i64: 1, 384>}, {transform_indices = @transform_6, window_bounds = array<i64: 1, 128, 128>}, {transform_indices = @transform_7, window_bounds = array<i64: 1, 1, 128>}, {pipeline_mode = #tpu.pipeline_mode<synchronous>, transform_indices = @transform_8, window_bounds = array<i64: 1, 128>}, {pipeline_mode = #tpu.pipeline_mode<synchronous>, transform_indices = @transform_9, window_bounds = array<i64: 1, 128>}]} {
    %c0_i32 = arith.constant 0 : i32
    %0 = arith.cmpi eq, %arg0, %c0_i32 : i32
    %1 = arith.extui %0 : i1 to i32
    %c0_i32_0 = arith.constant 0 : i32
    %2 = arith.cmpi ne, %1, %c0_i32_0 : i32
    scf.if %2 {
      %cst_21 = arith.constant -3.40282347E+38 : f32
      %34 = vector.broadcast %cst_21 : f32 to vector<1x1xf32>
      %c0_22 = arith.constant 0 : index
      %c0_23 = arith.constant 0 : index
      %35 = vector.load %arg12[%c0_22, %c0_23] : memref<1x1xf32, #tpu.memory_space<vmem>>, vector<1x1xf32>
      tpu.vector_store %arg12[%c0_22, %c0_23], %34 {strides = array<i32>} : memref<1x1xf32, #tpu.memory_space<vmem>>, vector<1x1xf32>,
      %cst_24 = arith.constant 0.000000e+00 : f32
      %36 = vector.broadcast %cst_24 : f32 to vector<1x1xf32>
      %c0_25 = arith.constant 0 : index
      %c0_26 = arith.constant 0 : index
      %37 = vector.load %arg13[%c0_25, %c0_26] : memref<1x1xf32, #tpu.memory_space<vmem>>, vector<1x1xf32>
      tpu.vector_store %arg13[%c0_25, %c0_26], %36 {strides = array<i32>} : memref<1x1xf32, #tpu.memory_space<vmem>>, vector<1x1xf32>,
      %c0_27 = arith.constant 0 : index
      %c0_28 = arith.constant 0 : index
      %c0_29 = arith.constant 0 : index
      %38 = vector.load %arg2[%c0_27, %c0_28, %c0_29] : memref<1x1x128xbf16, #tpu.memory_space<vmem>>, vector<1x1x128xbf16>
      %39 = vector.shape_cast %38 : vector<1x1x128xbf16> to vector<1x128xbf16>
      %cst_30 = arith.constant 0.000000e+00 : bf16
      %40 = vector.broadcast %cst_30 : bf16 to vector<1x128xbf16>
      %41 = arith.maximumf %39, %40 : vector<1x128xbf16>
      %c0_31 = arith.constant 0 : index
      %c0_32 = arith.constant 0 : index
      %42 = vector.load %arg3[%c0_31, %c0_32] : memref<1x128xf32, #tpu.memory_space<vmem>>, vector<1x128xf32>
      %43 = arith.truncf %42 : vector<1x128xf32> to vector<1x128xbf16>
      %c0_33 = arith.constant 0 : index
      %c0_34 = arith.constant 0 : index
      %44 = vector.load %arg4[%c0_33, %c0_34] : memref<128x384xbf16, #tpu.memory_space<vmem>>, vector<128x384xbf16>
      %cst_35 = arith.constant dense<0.000000e+00> : vector<1x384xf32>
      %45 = tpu.matmul %41, %44, %cst_35 {dimension_numbers = #tpu.dot_dimension_numbers<[1], [0], [0], [1], [0, 0, 1, 1], [], []>} : vector<1x128xbf16>, vector<128x384xbf16>, vector<1x384xf32> -> vector<1x384xf32>
      %c0_36 = arith.constant 0 : index
      %c0_37 = arith.constant 0 : index
      %46 = vector.load %arg6[%c0_36, %c0_37] : memref<1x384xf32, #tpu.memory_space<vmem>>, vector<1x384xf32>
      %47 = arith.addf %45, %46 : vector<1x384xf32>
      %c0_38 = arith.constant 0 : index
      %c0_39 = arith.constant 0 : index
      %48 = vector.load %arg5[%c0_38, %c0_39] : memref<128x384xbf16, #tpu.memory_space<vmem>>, vector<128x384xbf16>
      %cst_40 = arith.constant dense<0.000000e+00> : vector<1x384xf32>
      %49 = tpu.matmul %43, %48, %cst_40 {dimension_numbers = #tpu.dot_dimension_numbers<[1], [0], [0], [1], [0, 0, 1, 1], [], []>} : vector<1x128xbf16>, vector<128x384xbf16>, vector<1x384xf32> -> vector<1x384xf32>
      %c0_41 = arith.constant 0 : index
      %c0_42 = arith.constant 0 : index
      %50 = vector.load %arg7[%c0_41, %c0_42] : memref<1x384xf32, #tpu.memory_space<vmem>>, vector<1x384xf32>
      %51 = arith.addf %49, %50 : vector<1x384xf32>
      %52 = vector.extract_strided_slice %47 {offsets = [0, 0], sizes = [1, 128], strides = [1, 1]} : vector<1x384xf32> to vector<1x128xf32>
      %53 = vector.extract_strided_slice %51 {offsets = [0, 0], sizes = [1, 128], strides = [1, 1]} : vector<1x384xf32> to vector<1x128xf32>
      %54 = arith.addf %52, %53 : vector<1x128xf32>
      %55 = arith.negf %54 : vector<1x128xf32>
      %56 = math.exp %55 : vector<1x128xf32>
      %cst_43 = arith.constant 1.000000e+00 : f32
      %57 = vector.broadcast %cst_43 : f32 to vector<1x128xf32>
      %58 = arith.addf %57, %56 : vector<1x128xf32>
      %59 = arith.divf %57, %58 : vector<1x128xf32>
      %60 = vector.extract_strided_slice %47 {offsets = [0, 128], sizes = [1, 128], strides = [1, 1]} : vector<1x384xf32> to vector<1x128xf32>
      %61 = vector.extract_strided_slice %51 {offsets = [0, 128], sizes = [1, 128], strides = [1, 1]} : vector<1x384xf32> to vector<1x128xf32>
      %62 = arith.addf %60, %61 : vector<1x128xf32>
      %63 = arith.negf %62 : vector<1x128xf32>
      %64 = math.exp %63 : vector<1x128xf32>
      %cst_44 = arith.constant 1.000000e+00 : f32
      %65 = vector.broadcast %cst_44 : f32 to vector<1x128xf32>
      %66 = arith.addf %65, %64 : vector<1x128xf32>
      %67 = arith.divf %65, %66 : vector<1x128xf32>
      %68 = vector.extract_strided_slice %47 {offsets = [0, 256], sizes = [1, 128], strides = [1, 1]} : vector<1x384xf32> to vector<1x128xf32>
      %69 = vector.extract_strided_slice %51 {offsets = [0, 256], sizes = [1, 128], strides = [1, 1]} : vector<1x384xf32> to vector<1x128xf32>
      %70 = arith.mulf %59, %69 : vector<1x128xf32>
      %71 = arith.addf %68, %70 : vector<1x128xf32>
      %72 = math.tanh %71 : vector<1x128xf32>
      %cst_45 = arith.constant 1.000000e+00 : f32
      %73 = vector.broadcast %cst_45 : f32 to vector<1x128xf32>
      %74 = arith.subf %73, %67 : vector<1x128xf32>
      %75 = arith.mulf %74, %72 : vector<1x128xf32>
      %c0_46 = arith.constant 0 : index
      %c0_47 = arith.constant 0 : index
      %76 = vector.load %arg3[%c0_46, %c0_47] : memref<1x128xf32, #tpu.memory_space<vmem>>, vector<1x128xf32>
      %77 = arith.mulf %67, %76 : vector<1x128xf32>
      %78 = arith.addf %75, %77 : vector<1x128xf32>
      %c0_48 = arith.constant 0 : index
      %c0_49 = arith.constant 0 : index
      %79 = vector.load %arg11[%c0_48, %c0_49] : memref<1x128xf32, #tpu.memory_space<vmem>>, vector<1x128xf32>
      tpu.vector_store %arg11[%c0_48, %c0_49], %78 {strides = array<i32>} : memref<1x128xf32, #tpu.memory_space<vmem>>, vector<1x128xf32>,
    } else {
    }
    %c0 = arith.constant 0 : index
    %c0_1 = arith.constant 0 : index
    %3 = vector.load %arg11[%c0, %c0_1] : memref<1x128xf32, #tpu.memory_space<vmem>>, vector<1x128xf32>
    %4 = arith.truncf %3 : vector<1x128xf32> to vector<1x128xbf16>
    %c0_2 = arith.constant 0 : index
    %c0_3 = arith.constant 0 : index
    %c0_4 = arith.constant 0 : index
    %5 = vector.load %arg8[%c0_2, %c0_3, %c0_4] : memref<1x128x128xbf16, #tpu.memory_space<vmem>>, vector<1x128x128xbf16>
    %6 = vector.shape_cast %5 : vector<1x128x128xbf16> to vector<128x128xbf16>
    %cst = arith.constant dense<0.000000e+00> : vector<1x128xf32>
    %7 = tpu.matmul %4, %6, %cst {dimension_numbers = #tpu.dot_dimension_numbers<[1], [0], [0], [1], [0, 0, 1, 1], [], []>} : vector<1x128xbf16>, vector<128x128xbf16>, vector<1x128xf32> -> vector<1x128xf32>
    %c0_5 = arith.constant 0 : index
    %c0_6 = arith.constant 0 : index
    %c0_7 = arith.constant 0 : index
    %8 = vector.load %arg9[%c0_5, %c0_6, %c0_7] : memref<1x1x128xf32, #tpu.memory_space<vmem>>, vector<1x1x128xf32>
    %9 = vector.shape_cast %8 : vector<1x1x128xf32> to vector<1x128xf32>
    %10 = arith.addf %7, %9 : vector<1x128xf32>
    %c128_i32 = arith.constant 128 : i32
    %11 = arith.muli %arg0, %c128_i32 : i32
    %12 = tpu.assume_multiple %11, 128 : i32
    %c0_8 = arith.constant 0 : index
    %13 = arith.index_cast %12 : i32 to index
    %14 = vector.load %arg10[%c0_8, %13] : memref<1x128xf32, #tpu.memory_space<vmem>>, vector<1x128xf32>
    tpu.vector_store %arg10[%c0_8, %13], %10 {strides = array<i32>} : memref<1x128xf32, #tpu.memory_space<vmem>>, vector<1x128xf32>,
    %c0_9 = arith.constant 0 : index
    %c0_10 = arith.constant 0 : index
    %15 = vector.load %arg12[%c0_9, %c0_10] : memref<1x1xf32, #tpu.memory_space<vmem>>, vector<1x1xf32>
    %cst_11 = arith.constant dense<0xFF800000> : vector<1xf32>
    %16 = vector.multi_reduction <maximumf>, %10, %cst_11 [1] : vector<1x128xf32> to vector<1xf32>
    %17 = vector.shape_cast %16 : vector<1xf32> to vector<1x1xf32>
    %18 = arith.maximumf %15, %17 : vector<1x1xf32>
    %c0_12 = arith.constant 0 : index
    %c0_13 = arith.constant 0 : index
    %19 = vector.load %arg13[%c0_12, %c0_13] : memref<1x1xf32, #tpu.memory_space<vmem>>, vector<1x1xf32>
    %20 = arith.subf %15, %18 : vector<1x1xf32>
    %21 = math.exp %20 : vector<1x1xf32>
    %22 = arith.mulf %19, %21 : vector<1x1xf32>
    %23 = vector.broadcast %18 : vector<1x1xf32> to vector<1x128xf32>
    %24 = arith.subf %10, %23 : vector<1x128xf32>
    %25 = math.exp %24 : vector<1x128xf32>
    %cst_14 = arith.constant dense<0.000000e+00> : vector<1xf32>
    %26 = vector.multi_reduction <add>, %25, %cst_14 [1] : vector<1x128xf32> to vector<1xf32>
    %27 = vector.shape_cast %26 : vector<1xf32> to vector<1x1xf32>
    %28 = arith.addf %22, %27 : vector<1x1xf32>
    %c0_15 = arith.constant 0 : index
    %c0_16 = arith.constant 0 : index
    %29 = vector.load %arg13[%c0_15, %c0_16] : memref<1x1xf32, #tpu.memory_space<vmem>>, vector<1x1xf32>
    tpu.vector_store %arg13[%c0_15, %c0_16], %28 {strides = array<i32>} : memref<1x1xf32, #tpu.memory_space<vmem>>, vector<1x1xf32>,
    %c0_17 = arith.constant 0 : index
    %c0_18 = arith.constant 0 : index
    %30 = vector.load %arg12[%c0_17, %c0_18] : memref<1x1xf32, #tpu.memory_space<vmem>>, vector<1x1xf32>
    tpu.vector_store %arg12[%c0_17, %c0_18], %18 {strides = array<i32>} : memref<1x1xf32, #tpu.memory_space<vmem>>, vector<1x1xf32>,
    %c0_i32_19 = arith.constant 0 : i32
    %31 = arith.cmpi eq, %arg0, %c0_i32_19 : i32
    %32 = arith.extui %31 : i1 to i32
    %c0_i32_20 = arith.constant 0 : i32
    %33 = arith.cmpi ne, %32, %c0_i32_20 : i32
    scf.if %33 {
      %c0_21 = arith.constant 0 : index
      %c0_22 = arith.constant 0 : index
      %34 = vector.load %arg12[%c0_21, %c0_22] : memref<1x1xf32, #tpu.memory_space<vmem>>, vector<1x1xf32>
      %c0_23 = arith.constant 0 : index
      %c0_24 = arith.constant 0 : index
      %35 = vector.load %arg13[%c0_23, %c0_24] : memref<1x1xf32, #tpu.memory_space<vmem>>, vector<1x1xf32>
      %36 = math.log %35 : vector<1x1xf32>
      %37 = arith.addf %34, %36 : vector<1x1xf32>
      %c0_25 = arith.constant 0 : index
      %c0_26 = arith.constant 0 : index
      %38 = vector.load %arg10[%c0_25, %c0_26] : memref<1x128xf32, #tpu.memory_space<vmem>>, vector<1x128xf32>
      %39 = vector.broadcast %37 : vector<1x1xf32> to vector<1x128xf32>
      %40 = arith.subf %38, %39 : vector<1x128xf32>
      %c0_27 = arith.constant 0 : index
      %c0_28 = arith.constant 0 : index
      %41 = vector.load %arg10[%c0_27, %c0_28] : memref<1x128xf32, #tpu.memory_space<vmem>>, vector<1x128xf32>
      tpu.vector_store %arg10[%c0_27, %c0_28], %40 {strides = array<i32>} : memref<1x128xf32, #tpu.memory_space<vmem>>, vector<1x128xf32>,
    } else {
    }
    return
  }
  func.func @transform_0(%arg0: i32, %arg1: memref<1xi32, #tpu.memory_space<smem>>) -> (i32, i32, i32) {
    %c0 = arith.constant 0 : index
    %0 = memref.load %arg1[%c0] : memref<1xi32, #tpu.memory_space<smem>>
    %c0_i32 = arith.constant 0 : i32
    %c0_i32_0 = arith.constant 0 : i32
    %c0_i32_1 = arith.constant 0 : i32
    return %0, %c0_i32, %c0_i32_0 : i32, i32, i32
  }
  func.func @transform_1(%arg0: i32, %arg1: memref<1xi32, #tpu.memory_space<smem>>) -> (i32, i32) {
    %c0_i32 = arith.constant 0 : i32
    %c0_i32_0 = arith.constant 0 : i32
    %c0_i32_1 = arith.constant 0 : i32
    return %c0_i32, %c0_i32_0 : i32, i32
  }
  func.func @transform_2(%arg0: i32, %arg1: memref<1xi32, #tpu.memory_space<smem>>) -> (i32, i32) {
    %c0_i32 = arith.constant 0 : i32
    %c0_i32_0 = arith.constant 0 : i32
    %c0_i32_1 = arith.constant 0 : i32
    return %c0_i32, %c0_i32_0 : i32, i32
  }
  func.func @transform_3(%arg0: i32, %arg1: memref<1xi32, #tpu.memory_space<smem>>) -> (i32, i32) {
    %c0_i32 = arith.constant 0 : i32
    %c0_i32_0 = arith.constant 0 : i32
    %c0_i32_1 = arith.constant 0 : i32
    return %c0_i32, %c0_i32_0 : i32, i32
  }
  func.func @transform_4(%arg0: i32, %arg1: memref<1xi32, #tpu.memory_space<smem>>) -> (i32, i32) {
    %c0_i32 = arith.constant 0 : i32
    %c0_i32_0 = arith.constant 0 : i32
    %c0_i32_1 = arith.constant 0 : i32
    return %c0_i32, %c0_i32_0 : i32, i32
  }
  func.func @transform_5(%arg0: i32, %arg1: memref<1xi32, #tpu.memory_space<smem>>) -> (i32, i32) {
    %c0_i32 = arith.constant 0 : i32
    %c0_i32_0 = arith.constant 0 : i32
    %c0_i32_1 = arith.constant 0 : i32
    return %c0_i32, %c0_i32_0 : i32, i32
  }
  func.func @transform_6(%arg0: i32, %arg1: memref<1xi32, #tpu.memory_space<smem>>) -> (i32, i32, i32) {
    %c0_i32 = arith.constant 0 : i32
    %c0_i32_0 = arith.constant 0 : i32
    %c0_i32_1 = arith.constant 0 : i32
    return %arg0, %c0_i32, %c0_i32_0 : i32, i32, i32
  }
  func.func @transform_7(%arg0: i32, %arg1: memref<1xi32, #tpu.memory_space<smem>>) -> (i32, i32, i32) {
    %c0_i32 = arith.constant 0 : i32
    %c0_i32_0 = arith.constant 0 : i32
    %c0_i32_1 = arith.constant 0 : i32
    return %arg0, %c0_i32, %c0_i32_0 : i32, i32, i32
  }
  func.func @transform_8(%arg0: i32, %arg1: memref<1xi32, #tpu.memory_space<smem>>) -> (i32, i32) {
    %c0_i32 = arith.constant 0 : i32
    %c0_i32_0 = arith.constant 0 : i32
    %c0_i32_1 = arith.constant 0 : i32
    return %c0_i32, %c0_i32_0 : i32, i32
  }
  func.func @transform_9(%arg0: i32, %arg1: memref<1xi32, #tpu.memory_space<smem>>) -> (i32, i32) {
    %c0_i32 = arith.constant 0 : i32
    %c0_i32_0 = arith.constant 0 : i32
    %c0_i32_1 = arith.constant 0 : i32
    return %c0_i32, %c0_i32_0 : i32, i32
  }
}

</mosaic_0001>

<bundles_post_ra>
// kernel: _lambda_.1
= control target key start
LH: loop header
LB: loop body
LE: loop exit
PB: predicated region body
PF: predicated region fallthrough
CT: control target
= control target key end

     0   :  { %v1054_v2 = vmov 0.0   ;;  %v1055_v3 = vmov 0   ;;  %vm1056_vm0 = vmmov 0   ;;  %s1374_s0 = inlined_call_operand.<no memory space> [shape: s32[1], index: 0, kind: input, shape index: {}]   ;;  %s1375_s1 = inlined_call_operand.vmem [shape: bf16[64,1,128], index: 1, kind: input, shape index: {}]   ;;  %s1376_s2 = inlined_call_operand.vmem [shape: f32[1,128], index: 2, kind: input, shape index: {}]   ;;  %s1377_s3 = inlined_call_operand.vmem [shape: bf16[128,384], index: 3, kind: input, shape index: {}]   ;;  %s1378_s4 = inlined_call_operand.vmem [shape: bf16[128,384], index: 4, kind: input, shape index: {}]   ;;  %s1379_s5 = inlined_call_operand.vmem [shape: f32[1,384], index: 5, kind: input, shape index: {}]   ;;  %s1380_s6 = inlined_call_operand.vmem [shape: f32[1,384], index: 6, kind: input, shape index: {}]   ;;  %s1381_s7 = inlined_call_operand.vmem [shape: bf16[1,128,128], index: 7, kind: input, shape index: {}]   ;;  %s1382_s8 = inlined_call_operand.vmem [shape: f32[1,1,128], index: 8, kind: input, shape index: {}]   ;;  %s1383_s9 = inlined_call_operand.hbm [shape: f32[1,128], index: 9, kind: output, shape index: {0}]   ;;  %s1384_s10 = inlined_call_operand.vmem [shape: f32[1,128], index: 10, kind: output, shape index: {1}]  }
   0x1   :  { %v942_v0 = vld [vmem:[%s1377_s3 + $0x4] ss:$12 sps:$4 sm:$0xff]   ;;  %v944_v1 = vld [vmem:[%s1377_s3] ss:$12 sps:$4 sm:$0xff]   ;;  %867 = vmatprep.subr.bf16.mxu1 %v1054_v2  ;;  %269 = vmatprep.mubr.bf16.mxu0 %v1055_v3  ;;  %v945_v4 = vld [vmem:[%s1377_s3 + $0x1c] ss:$12 sps:$4 sm:$0xff]  }
   0x2   :  { %237 = vmatprep.subr.bf16.mxu0 %v942_v0  ;;  %883 = vmatprep.mubr.msk.bf16.mxu1 %vm1056_vm0, %v1054_v2  ;;  %v947_v5 = vld [vmem:[%s1377_s3 + $0x18] ss:$12 sps:$4 sm:$0xff]   ;;  %v948_v6 = vld [vmem:[%s1377_s3 + $0x34] ss:$12 sps:$4 sm:$0xff]   ;;  %v950_v7 = vld [vmem:[%s1377_s3 + $0x30] ss:$12 sps:$4 sm:$0xff]  }
   0x3   :  { %238 = vmatpush1.bf16.msra.mxu0 %v944_v1  ;;  %940 = vset.pattern.permute.xlu0 %v1055_v3  ;;  %v951_v8 = vld [vmem:[%s1377_s3 + $0x4c] ss:$12 sps:$4 sm:$0xff]   ;;  %v962_v9 = vld [vmem:[%s1377_s3 + $0x8] ss:$12 sps:$4 sm:$0xff]   ;;  %v954_v11 = vld [vmem:[%s1377_s3 + $0x64] ss:$12 sps:$4 sm:$0xff]  }
   0x4   :  { %239 = vmatprep.subr.bf16.mxu0 %v945_v4  ;;  %941 = vset.pattern.permute.xlu1 %v1055_v3  ;;  %v953_v10 = vld [vmem:[%s1377_s3 + $0x48] ss:$12 sps:$4 sm:$0xff]   ;;  %v966_v12 = vld [vmem:[%s1377_s3 + $0x20] ss:$12 sps:$4 sm:$0xff]   ;;  %p44_p0 = scmp.lt.s32.totalorder %s1374_s0, 63 }
   0x5   :  { %868 = vmatpush3.bf16.msra.mxu1 %v962_v9  ;;  %v956_v13 = vld [vmem:[%s1377_s3 + $0x60] ss:$12 sps:$4 sm:$0xff]   ;;  %v968_v14 = vld [vmem:[%s1377_s3 + $0x38] ss:$12 sps:$4 sm:$0xff]   ;;  %v957_v15 = vld [vmem:[%s1377_s3 + $0x7c] ss:$12 sps:$4 sm:$0xff]  }
   0x6   :  { %869 = vmatprep.subr.bf16.mxu1 %v1054_v2  ;;  %v959_v16 = vld [vmem:[%s1377_s3 + $0x78] ss:$12 sps:$4 sm:$0xff]   ;;  %s1386_s0 = smov (!%p44_p0, %s1374_s0), 63  ;;  %v972_v17 = vld [vmem:[%s1377_s3 + $0x50] ss:$12 sps:$4 sm:$0xff]  }
   0x7   :  { %240 = vmatpush1.bf16.msra.mxu0 %v947_v5  ;;  %v960_v18 = vld [vmem:[%s1377_s3 + $0x94] ss:$12 sps:$4 sm:$0xff]   ;;  %v963_v19 = vld [vmem:[%s1377_s3 + $0x90] ss:$12 sps:$4 sm:$0xff]   ;;  %s46_s15 = scalar_lea.vmem %s1375_s1, %s1386_s0  ;;  %v964_v21 = vld [vmem:[%s1377_s3 + $0xac] ss:$12 sps:$4 sm:$0xff]  }
   0x8   :  { %241 = vmatprep.subr.bf16.mxu0 %v948_v6  ;;  %v976_v20 = vld [vmem:[%s1377_s3 + $0x68] ss:$12 sps:$4 sm:$0xff]   ;;  %v56_v23 = vld [vmem:[%s46_s15] sm:$0x1]  ;;  %v971_v25 = vld [vmem:[%s1378_s4 + $0x4] ss:$12 sps:$4 sm:$0xff]  }
   0x9   :  { %870 = vmatpush3.bf16.msra.mxu1 %v966_v12  ;;  %v967_v22 = vld [vmem:[%s1377_s3 + $0xa8] ss:$12 sps:$4 sm:$0xff]   ;;  %v980_v24 = vld [vmem:[%s1377_s3 + $0x80] ss:$12 sps:$4 sm:$0xff]   ;;  %v57_v26 = vmax.bf16 %v1055_v3, %v56_v23  ;;  %v984_v28 = vld [vmem:[%s1377_s3 + $0x98] ss:$12 sps:$4 sm:$0xff]  }
   0xa   :  { %871 = vmatprep.subr.bf16.mxu1 %v1054_v2  ;;  %v969_v27 = vld [vmem:[%s1378_s4] ss:$12 sps:$4 sm:$0xff]   ;;  %v975_v29 = vld [vmem:[%s1378_s4 + $0x1c] ss:$12 sps:$4 sm:$0xff]   ;;  %v973_v30 = vld [vmem:[%s1378_s4 + $0x18] ss:$12 sps:$4 sm:$0xff]  }
   0xb   :  { %242 = vmatpush1.bf16.msra.mxu0 %v950_v7  ;;  %v988_v31 = vld [vmem:[%s1377_s3 + $0xb0] ss:$12 sps:$4 sm:$0xff]   ;;  %v979_v32 = vld [vmem:[%s1378_s4 + $0x34] ss:$12 sps:$4 sm:$0xff]   ;;  %v983_v34 = vld [vmem:[%s1378_s4 + $0x4c] ss:$12 sps:$4 sm:$0xff]  }
   0xc   :  { %243 = vmatprep.subr.bf16.mxu0 %v951_v8  ;;  %v977_v33 = vld [vmem:[%s1378_s4 + $0x30] ss:$12 sps:$4 sm:$0xff]   ;;  %v995_v35 = vld [vmem:[%s1378_s4 + $0x8] ss:$12 sps:$4 sm:$0xff]   ;;  %v999_v37 = vld [vmem:[%s1378_s4 + $0x20] ss:$12 sps:$4 sm:$0xff]  }
   0xd   :  { %872 = vmatpush3.bf16.msra.mxu1 %v968_v14  ;;  %v981_v36 = vld [vmem:[%s1378_s4 + $0x48] ss:$12 sps:$4 sm:$0xff]  }
   0xe   :  { %873 = vmatprep.subr.bf16.mxu1 %v1054_v2 }
   0xf   :  { %244 = vmatpush1.bf16.msra.mxu0 %v953_v10 }
  0x10   :  { %245 = vmatprep.subr.bf16.mxu0 %v954_v11 }
  0x11   :  { %874 = vmatpush3.bf16.msra.mxu1 %v972_v17 }
  0x12   :  { %875 = vmatprep.subr.bf16.mxu1 %v1054_v2 }
  0x13   :  { %246 = vmatpush1.bf16.msra.mxu0 %v956_v13 }
  0x14   :  { %247 = vmatprep.subr.bf16.mxu0 %v957_v15 }
  0x15   :  { %876 = vmatpush3.bf16.msra.mxu1 %v976_v20 }
  0x16   :  { %877 = vmatprep.subr.bf16.mxu1 %v1054_v2 }
  0x17   :  { %248 = vmatpush1.bf16.msra.mxu0 %v959_v16 }
  0x18   :  { %249 = vmatprep.subr.bf16.mxu0 %v960_v18 }
  0x19   :  { %878 = vmatpush3.bf16.msra.mxu1 %v980_v24 }
  0x1a   :  { %879 = vmatprep.subr.bf16.mxu1 %v1054_v2 }
  0x1b   :  { %250 = vmatpush1.bf16.msra.mxu0 %v963_v19 }
  0x1c   :  { %251 = vmatprep.subr.bf16.mxu0 %v964_v21 }
  0x1d   :  { %880 = vmatpush3.bf16.msra.mxu1 %v984_v28 }
  0x1e   :  { %881 = vmatprep.subr.bf16.mxu1 %v1054_v2 }
  0x1f   :  { %252 = vmatpush1.bf16.msra.mxu0 %v967_v22 }
  0x20   :  { %495 = vmatprep.subr.bf16.mxu0 %v971_v25 }
  0x21   :  { %882 = vmatpush3.bf16.msra.mxu1 %v988_v31 }
  0x22   :  { %270 = vmatmul.mubr.bf16.vlgmr.msra.gmra.mrb[0].mxu0 %v57_v26  ;;  %887 = vmatprep.subr.bf16.mxu1 %v1054_v2 }
  0x23   :  { %496 = vmatpush1.bf16.msra.mxu0 %v969_v27  ;;  %527 = vmatprep.mubr.bf16.mxu0 %v1055_v3 }
  0x24   :  { %497 = vmatprep.subr.bf16.mxu0 %v975_v29  ;;  %884 = vmatmul.mubr.bf16.vlgmr.msra.gmra.mrb[0].mxu1 %v57_v26 }
  0x25   :  { %888 = vmatpush3.bf16.msra.mxu1 %v995_v35 }
  0x27   :  { %498 = vmatpush1.bf16.msra.mxu0 %v973_v30 }
  0x28   :  { %499 = vmatprep.subr.bf16.mxu0 %v979_v32 }
  0x2b   :  { %500 = vmatpush1.bf16.msra.mxu0 %v977_v33 }
  0x2c   :  { %17 = vsyncpa [#allocation7], 0  ;;  %501 = vmatprep.subr.bf16.mxu0 %v983_v34  ;;  %v987_v38 = vld [vmem:[%s1378_s4 + $0x64] ss:$12 sps:$4 sm:$0xff]   ;;  %889 = vmatprep.subr.bf16.mxu1 %v1054_v2  ;;  %v985_v39 = vld [vmem:[%s1378_s4 + $0x60] ss:$12 sps:$4 sm:$0xff]   ;;  %v222_v3 = vlaneseq }
  0x2d   :  { %903 = vmatprep.mubr.msk.bf16.mxu1 %vm1056_vm0, %v1054_v2  ;;  %890 = vmatpush3.bf16.msra.mxu1 %v999_v37  ;;  %v1000_v40 = vld [vmem:[%s1378_s4 + $0x38] ss:$12 sps:$4 sm:$0xff]   ;;  %v991_v41 = vld [vmem:[%s1378_s4 + $0x7c] ss:$12 sps:$4 sm:$0xff]   ;;  %v994_v44 = vld [vmem:[%s1378_s4 + $0x94] ss:$12 sps:$4 sm:$0xff]  }
  0x2e   :  { %891 = vmatprep.subr.bf16.mxu1 %v1054_v2  ;;  %v989_v42 = vld [vmem:[%s1378_s4 + $0x78] ss:$12 sps:$4 sm:$0xff]   ;;  %v1001_v43 = vld [vmem:[%s1378_s4 + $0x50] ss:$12 sps:$4 sm:$0xff]   ;;  %v1002_v46 = vld [vmem:[%s1378_s4 + $0x68] ss:$12 sps:$4 sm:$0xff]  }
  0x2f   :  { %502 = vmatpush1.bf16.msra.mxu0 %v981_v36  ;;  %v992_v45 = vld [vmem:[%s1378_s4 + $0x90] ss:$12 sps:$4 sm:$0xff]   ;;  %v998_v47 = vld [vmem:[%s1378_s4 + $0xac] ss:$12 sps:$4 sm:$0xff]   ;;  %v996_v48 = vld [vmem:[%s1378_s4 + $0xa8] ss:$12 sps:$4 sm:$0xff]  }
  0x30   :  { %503 = vmatprep.subr.bf16.mxu0 %v987_v38  ;;  %v1283_v49 = vld [vmem:[%s1376_s2] sm:$0x1]  ;;  %v1004_v52 = vld [vmem:[%s1378_s4 + $0x98] ss:$12 sps:$4 sm:$0xff]   ;;  %v1005_v53 = vld [vmem:[%s1378_s4 + $0xb0] ss:$12 sps:$4 sm:$0xff]  }
  0x31   :  { %892 = vmatpush3.bf16.msra.mxu1 %v1000_v40  ;;  %v1003_v50 = vld [vmem:[%s1378_s4 + $0x80] ss:$12 sps:$4 sm:$0xff]   ;;  %v59_v51 = vpack.c.bf16 %v1283_v49, %v1283_v49  ;;  %v1008_v56 = vld [vmem:[%s1381_s7 + $0x10] sm:$0xff]   ;;  %v1009_v57 = vld [vmem:[%s1381_s7 + $0x18] sm:$0xff]   ;;  %v223_v4 = vshrl.u32 %v222_v3, 7  ;;  %vm53_vm1 = vcmask 0  }
  0x32   :  { %893 = vmatprep.subr.bf16.mxu1 %v1054_v2  ;;  %v1006_v54 = vld [vmem:[%s1381_s7] sm:$0xff]   ;;  %v1007_v55 = vld [vmem:[%s1381_s7 + $0x8] sm:$0xff]   ;;  %v1012_v60 = vld [vmem:[%s1381_s7 + $0x30] sm:$0xff]   ;;  %55 = vst.msk [vmem:[#allocation3] sm:$0x1] %vm53_vm1, %v1054_v2  ;;  %vm711_vm2 = vcmask 1040384  }
  0x33   :  { %504 = vmatpush1.bf16.msra.mxu0 %v985_v39  ;;  %v1010_v58 = vld [vmem:[%s1381_s7 + $0x20] sm:$0xff]   ;;  %v1011_v59 = vld [vmem:[%s1381_s7 + $0x28] sm:$0xff]   ;;  %v1013_v61 = vld [vmem:[%s1381_s7 + $0x38] sm:$0xff]   ;;  %v1333_v5 = vsub.s32 0, %v223_v4  ;;  %v228_v8 = vsub.s32 1, %v223_v4  ;;  %v232_v29 = vsub.s32 2, %v223_v4 }
  0x34   :  { %505 = vmatprep.subr.bf16.mxu0 %v991_v41  ;;  %v350_v6 = vld [vmem:[%s1380_s6] sm:$0x7] }
  0x35   :  { %894 = vmatpush3.bf16.msra.mxu1 %v1001_v43  ;;  %v92_v7 = vld [vmem:[%s1379_s5] sm:$0x7]  ;;  %v483_v10 = vrot.slane %v350_v6, %v1333_v5  ;;  %v487_v12 = vrot.slane %v350_v6, %v228_v8  ;;  %v491_v30 = vrot.slane %v350_v6, %v232_v29 }
  0x36   :  { %895 = vmatprep.subr.bf16.mxu1 %v1054_v2  ;;  %v225_v9 = vrot.slane %v92_v7, %v1333_v5  ;;  %v229_v11 = vrot.slane %v92_v7, %v228_v8  ;;  %v233_v32 = vrot.slane %v92_v7, %v232_v29 }
  0x37   :  { %506 = vmatpush1.bf16.msra.mxu0 %v989_v42 }
  0x38   :  { %507 = vmatprep.subr.bf16.mxu0 %v994_v44  ;;  %v927_v13 = vadd.f32 %v483_v10, %v225_v9  ;;  %v929_v15 = vadd.f32 %v487_v12, %v229_v11 }
  0x39   :  { %896 = vmatpush3.bf16.msra.mxu1 %v1002_v46  ;;  %v716_v3 = vld [vmem:[#allocation3] sm:$0x1] }
  0x3a   :  { %897 = vmatprep.subr.bf16.mxu1 %v1054_v2 }
  0x3b   :  { %508 = vmatpush1.bf16.msra.mxu0 %v992_v45 }
  0x3c   :  { %509 = vmatprep.subr.bf16.mxu0 %v998_v47  ;;  %v1057_v47 = vmov -3.4028235e+38  }
  0x3d   :  { %898 = vmatpush3.bf16.msra.mxu1 %v1003_v50  ;;  %54 = vst.msk [vmem:[#allocation2] sm:$0x1] %vm53_vm1, %v1057_v47 }
  0x3e   :  { %899 = vmatprep.subr.bf16.mxu1 %v1054_v2 }
  0x3f   :  { %510 = vmatpush1.bf16.msra.mxu0 %v996_v48  ;;  %v616_v48 = vld [vmem:[%s1382_s8] sm:$0x1]  ;;  %s1058_s8 = smov [#allocation6]  }
  0x40   :  { %907 = vmatprep.subr.bf16.mxu0 %v1054_v2 }
  0x41   :  { %900 = vmatpush3.bf16.msra.mxu1 %v1004_v52 }
  0x42   :  { %528 = vmatmul.mubr.bf16.vlgmr.msra.gmra.mrb[0].mxu0 %v59_v51  ;;  %901 = vmatprep.subr.bf16.mxu1 %v1054_v2 }
  0x43   :  { %923 = vmatprep.mubr.msk.bf16.mxu0 %vm1056_vm0, %v1054_v2  ;;  %908 = vmatpush3.bf16.msra.mxu0 %v1006_v54 }
  0x44   :  { %909 = vmatprep.subr.bf16.mxu0 %v1054_v2 }
  0x45   :  { %902 = vmatpush3.bf16.msra.mxu1 %v1005_v53 }
  0x47   :  { %910 = vmatpush3.bf16.msra.mxu0 %v1007_v55  ;;  %v710_v55 = vld [vmem:[#allocation2] sm:$0x1] }
  0x48   :  { %904 = vmatmul.mubr.bf16.vlgmr.msra.gmra.mrb[4].mxu1 %v59_v51  ;;  %911 = vmatprep.subr.bf16.mxu0 %v1054_v2 }
  0x4b   :  { %912 = vmatpush3.bf16.msra.mxu0 %v1008_v56 }
  0x4c   :  { %913 = vmatprep.subr.bf16.mxu0 %v1054_v2 }
  0x4f   :  { %914 = vmatpush3.bf16.msra.mxu0 %v1009_v57 }
  0x50   :  { %915 = vmatprep.subr.bf16.mxu0 %v1054_v2 }
  0x53   :  { %916 = vmatpush3.bf16.msra.mxu0 %v1010_v58 }
  0x54   :  { %917 = vmatprep.subr.bf16.mxu0 %v1054_v2 }
  0x57   :  { %918 = vmatpush3.bf16.msra.mxu0 %v1011_v59 }
  0x58   :  { %919 = vmatprep.subr.bf16.mxu0 %v1054_v2 }
  0x5b   :  { %920 = vmatpush3.bf16.msra.mxu0 %v1012_v60 }
  0x5c   :  { %921 = vmatprep.subr.bf16.mxu0 %v1054_v2 }
  0x5f   :  { %922 = vmatpush3.bf16.msra.mxu0 %v1013_v61 }
  0xf7   :  { %v312_v62 = vpop.f32.mrb[0].mxu1 }
  0xf8   :  { %v885_v63 = vpop.f32.mrb[1].mxu1  ;;  %v313_v36 = vadd.f32 %v312_v62, %v233_v32 }
  0xf9   :  { %v315_v0 = vpop.f32.mrb[2].mxu1 }
  0xfa   :  { %v886_v1 = vpop.f32.mrb[3].mxu1 }
 0x115   :  { %v529_v14 = vpop.f32.mrb[0].mxu0 }
 0x116   :  { %v928_v16 = vadd.f32 %v927_v13, %v529_v14  ;;  %v531_v17 = vpop.f32.mrb[1].mxu0 }
 0x117   :  { %v533_v18 = vpop.f32.mrb[2].mxu0  ;;  %v930_v21 = vadd.f32 %v929_v15, %v531_v17 }
 0x118   :  { %v830_v19 = vmul.f32 -1.442695, %v928_v16  ;;  %v534_v20 = vpop.f32.mrb[3].mxu0 }
 0x119   :  { %v831_v22 = vmul.f32 -1.442695, %v930_v21 }
 0x11a   :  { %1014 = vpow2.f32 %v830_v19 }
 0x11b   :  { %v570_v23 = vpop.f32.mrb[4].mxu1  ;;  %1016 = vpow2.f32 %v831_v22 }
 0x11c   :  { %v905_v24 = vpop.f32.mrb[5].mxu1  ;;  %v571_v34 = vadd.f32 %v570_v23, %v491_v30 }
 0x11d   :  { %v573_v25 = vpop.f32.mrb[6].mxu1 }
 0x11e   :  { %v906_v26 = vpop.f32.mrb[7].mxu1 }
 0x124   :  { %v1015_v27 = vpop.eup %1014 }
 0x125   :  { %v580_v28 = vadd.f32 1.0, %v1015_v27  ;;  %v1017_v31 = vpop.eup %1016 }
 0x126   :  { %v587_v33 = vadd.f32 1.0, %v1017_v31 }
 0x127   :  { %1018 = vrcp.f32 %v580_v28 }
 0x128   :  { %1020 = vrcp.f32 %v587_v33 }
 0x131   :  { %v1019_v35 = vpop.eup %1018 }
 0x132   :  { %v590_v37 = vmul.f32 %v1019_v35, %v571_v34  ;;  %v1021_v39 = vpop.eup %1020 }
 0x133   :  { %v593_v40 = vsub.f32 1.0, %v1021_v39  ;;  %v595_v42 = vmul.f32 %v1021_v39, %v1283_v49 }
 0x134   :  { %v591_v38 = vadd.f32 %v590_v37, %v313_v36 }
 0x136   :  { %1022 = vtanh.f32 %v591_v38 }
 0x140   :  { %v1023_v41 = vpop.eup %1022 }
 0x141   :  { %v594_v43 = vmul.f32 %v1023_v41, %v593_v40 }
 0x143   :  { %v596_v44 = vadd.f32 %v595_v42, %v594_v43 }
 0x145   :  { %597 = vst [vmem:[%s1384_s10] sm:$0x1] %v596_v44 }
 0x14c   :  { %v598_v45 = vld [vmem:[%s1384_s10] sm:$0x1]  ;;  %s766_s10 = sshll.u32 %s1058_s8, 4  ;;  %s767_s10 = int_to_ptr.vmem [resolvable:$true] %s766_s10 }
 0x14d   :  { %v599_v46 = vpack.c.bf16 %v598_v45, %v598_v45  ;;  %s1030_s2 = scalar_lea.vmem %s767_s10, 16  ;;  %s1034_s28 = scalar_lea.vmem %s767_s10, 32 }
 0x14e   :  { %p1031_p1 = scmp.ne.s32.totalorder %s767_s10, %s1030_s2  ;;  %p1035_p2 = scmp.lt.s32.totalorder %s767_s10, %s767_s10 }
 0x14f   :  { %924 = vmatmul.mubr.bf16.vlgmr.msra.gmra.mrb[4].mxu0 %v599_v46  ;;  %p1036_p3 = scmp.lt.s32.totalorder %s1034_s28, %s1030_s2 }
 0x151   :  { %p1037_p4 = por %p1036_p3, %p1035_p2 }
 0x153   :  { %p1038_p5 = pnand %p1037_p4, %p1031_p1 }
 0x222   :  { %v699_v49 = vpop.f32.mrb[4].mxu0 }
 0x223   :  { %v700_v50 = vadd.f32 %v699_v49, %v616_v48  ;;  %v925_v51 = vpop.f32.mrb[5].mxu0 }
 0x224   :  { %v702_v52 = vpop.f32.mrb[6].mxu0 }
 0x225   :  { %709 = vst [vmem:[#allocation6] sm:$0x1] %v700_v50  ;;  %v926_v53 = vpop.f32.mrb[7].mxu0  ;;  %v712_v54 = vsel %vm711_vm2, %v700_v50, -inf }
 0x226   :  { %713 = vmax.xlane.f32.xlu0 %v712_v54 }
 0x22c   :  { %v748_v15 = vld [vmem:[#allocation6] sm:$0x1] }
 0x2b3   :  { %v714_v56 = vpop.xlane.xlu0 %713 }
 0x2b4   :  { %v715_v57 = vmax.f32 %v710_v55, %v714_v56 }
 0x2b6   :  { %v717_v58 = vsub.f32 %v710_v55, %v715_v57  ;;  %739 = vst.msk [vmem:[#allocation2] sm:$0x1] %vm53_vm1, %v715_v57  ;;  %723 = vperm.xlu0 %940, %v715_v57  }
 0x2b8   :  { %v718_v0 = vmul.f32 1.442695, %v717_v58 }
 0x2bd   :  { %v743_v11 = vld [vmem:[#allocation2] sm:$0x1] }
 0x335   :  { %v724_v2 = vpop.permute.xlu0 %723 }
 0x336   :  { %v729_v59 = vrot.slane %v724_v2, %v1333_v5 }
 0x338   :  { %v730_v60 = vsub.f32 %v700_v50, %v729_v59 }
 0x33a   :  { %v731_v61 = vmul.f32 1.442695, %v730_v60 }
 0x33c   :  { %1024 = vpow2.f32 %v731_v61 }
 0x33d   :  { %1026 = vpow2.f32 %v718_v0 }
 0x346   :  { %v1025_v62 = vpop.eup %1024 }
 0x347   :  { %v733_v63 = vsel %vm711_vm2, %v1025_v62, 0.0  ;;  %v1027_v1 = vpop.eup %1026 }
 0x348   :  { %734 = vadd.xlane.f32.xlu1 %v733_v63  ;;  %v720_v4 = vmul.f32 %v1027_v1, %v716_v3 }
 0x3d5   :  { %v735_v6 = vpop.xlane.xlu1 %734 }
 0x3d6   :  { %v736_v7 = vadd.f32 %v735_v6, %v720_v4 }
 0x3d8   :  { %738 = vst.msk [vmem:[#allocation3] sm:$0x1] %vm53_vm1, %v736_v7 }
 0x3df   :  { %v744_v8 = vld [vmem:[#allocation3] sm:$0x1] }
 0x3e0   :  { %1028 = vlog2.f32 %v744_v8 }
 0x3ea   :  { %v1029_v9 = vpop.eup %1028 }
 0x3eb   :  { %v746_v10 = vmul.f32 0.6931472, %v1029_v9 }
 0x3ed   :  { %v747_v12 = vadd.f32 %v746_v10, %v743_v11 }
 0x3ef   :  { %751 = vperm.xlu1 %941, %v747_v12  }
 0x46e   :  { %v752_v13 = vpop.permute.xlu1 %751 }
 0x46f   :  { %v757_v14 = vrot.slane %v752_v13, %v1333_v5 }
 0x471   :  { %v758_v16 = vsub.f32 %v748_v15, %v757_v14 }
 0x473   :  { %759 = vst [vmem:[#allocation6] sm:$0x1] %v758_v16 }
 0x474   :  { %1041 = shalt.err (!%p1038_p5)
}
 0x475   :  { %s1042_s11 = scalar_lea.hbm %s1383_s9, 16 }
 0x476   :  { %p1043_p6 = scmp.ne.s32.totalorder %s1383_s9, %s1042_s11  ;;  %p1046_p7 = scmp.lt.u32.totalorder %s1042_s11, %s1383_s9 }
 0x478   :  { %p1048_p8 = pnand %p1046_p7, %p1043_p6 }
 0x47a   :  { %1051 = shalt.err (!%p1048_p8)
}
 0x47b   :  { %769 = dma.vmem_to_hbm [thread:$0]  %s767_s10, 16, %s1383_s9, [#allocation7]  }
 0x47c   :  { %1052 = dma.done.wait [#allocation7], 16  }
 0x47d   :  { %1053 = vsyncadd [#allocation7], 4294967280 }
 0x47e   :  { %777 = vsyncpa [#allocation7], 1 }

</bundles_post_ra>
